<compile_context>
chip_gen: v5e
topology: v5e:2x2
jax: 0.10.0
libtpu: 0.0.40
codegen_flags: <defaults>
</compile_context>

<pallas_src>
import functools

import jax
import jax.numpy as jnp
from jax.experimental import pallas as pl
from jax.experimental.pallas import tpu as pltpu


def _grid_gen_kernel(theta_ref, out_ref, *, height, width, tile_h):
    """Write one (1, tile_h, 2*width) interleaved output tile.

    theta_ref : (B*6,) float32 in SMEM (scalar-prefetched), row-major (b, j, k).
    out_ref   : (1, tile_h, 2*width) float32 VMEM tile of the (B, H, 2W) output.

    out[0, r, 2*w + j] = theta[b,j,0]*y(h) + theta[b,j,1]*x(w) + theta[b,j,2]
    with h = tile*tile_h + r, y(h) = -1 + 2h/H, x(w) = -1 + 2w/W.
    """
    b = pl.program_id(0)
    t = pl.program_id(1)

    base = b * 6
    t00 = theta_ref[base + 0]
    t01 = theta_ref[base + 1]
    t02 = theta_ref[base + 2]
    t10 = theta_ref[base + 3]
    t11 = theta_ref[base + 4]
    t12 = theta_ref[base + 5]

    shape = (tile_h, 2 * width)
    row = jax.lax.broadcasted_iota(jnp.int32, shape, 0) + t * tile_h
    col = jax.lax.broadcasted_iota(jnp.int32, shape, 1)
    w = col >> 1                    # pixel column index
    odd = (col & 1) == 1            # even lanes -> theta row 0, odd -> row 1

    y = -1.0 + (2.0 / height) * row.astype(jnp.float32)   # grid[:, :, 0]
    x = -1.0 + (2.0 / width) * w.astype(jnp.float32)      # grid[:, :, 1]

    cy = jnp.where(odd, t10, t00)
    cx = jnp.where(odd, t11, t01)
    c1 = jnp.where(odd, t12, t02)

    out_ref[0, :, :] = cy * y + cx * x + c1


def grid_generator(theta: jnp.ndarray, height: int, width: int,
                   *, max_block_bytes: int = 1 << 20) -> jnp.ndarray:
    """theta: (B, 2, 3) float32 -> (B, H, W, 2) float32 (GridGenerator.forward)."""
    B = theta.shape[0]
    w2 = 2 * width
    row_bytes = 4 * w2

    # Tile H so one output block stays ~<= max_block_bytes (double-buffered by
    # Pallas); tile_h is a multiple of 8 unless it equals the full H extent.
    if height * row_bytes <= max_block_bytes:
        tile_h = height
    else:
        tile_h = max(8, (max_block_bytes // row_bytes) // 8 * 8)
        tile_h = min(tile_h, height)
    n_tiles = pl.cdiv(height, tile_h)

    kernel = functools.partial(
        _grid_gen_kernel, height=height, width=width, tile_h=tile_h)

    cost = pl.CostEstimate(
        flops=10 * B * height * width,
        transcendentals=0,
        bytes_accessed=8 * B * height * width + 4 * theta.size,
    )

    out = pl.pallas_call(
        kernel,
        out_shape=jax.ShapeDtypeStruct((B, height, w2), jnp.float32),
        grid_spec=pltpu.PrefetchScalarGridSpec(
            num_scalar_prefetch=1,                 # theta (B*6,) -> SMEM
            grid=(B, n_tiles),
            in_specs=[],                           # no tensor inputs at all
            out_specs=pl.BlockSpec((1, tile_h, w2),
                                   lambda b, t, theta_s: (b, t, 0)),
        ),
        compiler_params=pltpu.CompilerParams(
            dimension_semantics=("parallel", "parallel"),
        ),
        cost_estimate=cost,
    )(theta.reshape(-1).astype(jnp.float32))

    # (B, H, 2W) is already interleaved [o0, o1] per pixel -> free view.
    return out.reshape(B, height, width, 2)


def _reference(theta: jnp.ndarray, height: int, width: int) -> jnp.ndarray:
    """Pure-JAX replica of the PyTorch forward."""
    ys = -1.0 + (2.0 / height) * jnp.arange(height, dtype=jnp.float32)
    xs = -1.0 + (2.0 / width) * jnp.arange(width, dtype=jnp.float32)
    base = jnp.stack(
        [jnp.broadcast_to(ys[:, None], (height, width)),
         jnp.broadcast_to(xs[None, :], (height, width)),
         jnp.ones((height, width), jnp.float32)],
        axis=-1,
    ).reshape(height * width, 3)
    B = theta.shape[0]
    return jnp.einsum("pk,bjk->bpj", base, theta).reshape(B, height, width, 2)


if __name__ == "__main__":
    key = jax.random.PRNGKey(0)

    # Small shape consistent with the module (single whole-image block).
    B, H, W = 2, 16, 16
    theta = jax.random.normal(key, (B, 2, 3), dtype=jnp.float32)
    out = jax.block_until_ready(grid_generator(theta, H, W))
    ref = _reference(theta, H, W)
    assert out.shape == (B, H, W, 2), out.shape
    assert jnp.allclose(out, ref, atol=1e-5, rtol=1e-5), \
        float(jnp.max(jnp.abs(out - ref)))

    # Exercise the tiled path (tile_h=16 -> 3 tiles along H, lane-dense 2W=128).
    B2, H2, W2 = 2, 48, 64
    theta2 = jax.random.normal(jax.random.PRNGKey(0), (B2, 2, 3),
                               dtype=jnp.float32)
    out2 = jax.block_until_ready(
        grid_generator(theta2, H2, W2, max_block_bytes=8192))
    ref2 = _reference(theta2, H2, W2)
    assert out2.shape == (B2, H2, W2, 2), out2.shape
    assert jnp.allclose(out2, ref2, atol=1e-5, rtol=1e-5), \
        float(jnp.max(jnp.abs(out2 - ref2)))

    print("KERNEL_OK")
</pallas_src>

<mosaic_0001>
module attributes {stable_mosaic.version = 11 : i64} {
  func.func @_grid_gen_kernel(%arg0: i32, %arg1: i32, %arg2: memref<12xf32, #tpu.memory_space<smem>>, %arg3: memref<1x16x32xf32, #tpu.memory_space<vmem>>) attributes {dimension_semantics = [#tpu.dimension_semantics<parallel>, #tpu.dimension_semantics<parallel>], iteration_bounds = array<i64: 2, 1>, scalar_prefetch = 1 : i64, scratch_operands = 0 : i64, tpu.core_type = #tpu.core_type<tc>, window_params = [{transform_indices = @transform_0, window_bounds = array<i64: 1, 16, 32>}]} {
    %c6_i32 = arith.constant 6 : i32
    %0 = arith.muli %arg0, %c6_i32 : i32
    %c0_i32 = arith.constant 0 : i32
    %1 = arith.addi %0, %c0_i32 : i32
    %2 = arith.index_cast %1 : i32 to index
    %3 = memref.load %arg2[%2] : memref<12xf32, #tpu.memory_space<smem>>
    %c1_i32 = arith.constant 1 : i32
    %4 = arith.addi %0, %c1_i32 : i32
    %5 = arith.index_cast %4 : i32 to index
    %6 = memref.load %arg2[%5] : memref<12xf32, #tpu.memory_space<smem>>
    %c2_i32 = arith.constant 2 : i32
    %7 = arith.addi %0, %c2_i32 : i32
    %8 = arith.index_cast %7 : i32 to index
    %9 = memref.load %arg2[%8] : memref<12xf32, #tpu.memory_space<smem>>
    %c3_i32 = arith.constant 3 : i32
    %10 = arith.addi %0, %c3_i32 : i32
    %11 = arith.index_cast %10 : i32 to index
    %12 = memref.load %arg2[%11] : memref<12xf32, #tpu.memory_space<smem>>
    %c4_i32 = arith.constant 4 : i32
    %13 = arith.addi %0, %c4_i32 : i32
    %14 = arith.index_cast %13 : i32 to index
    %15 = memref.load %arg2[%14] : memref<12xf32, #tpu.memory_space<smem>>
    %c5_i32 = arith.constant 5 : i32
    %16 = arith.addi %0, %c5_i32 : i32
    %17 = arith.index_cast %16 : i32 to index
    %18 = memref.load %arg2[%17] : memref<12xf32, #tpu.memory_space<smem>>
    %19 = tpu.iota {dimensions = array<i32: 0>} : vector<16x32xi32>
    %c16_i32 = arith.constant 16 : i32
    %20 = arith.muli %arg1, %c16_i32 : i32
    %21 = vector.broadcast %20 : i32 to vector<16x32xi32>
    %22 = arith.addi %19, %21 : vector<16x32xi32>
    %23 = tpu.iota {dimensions = array<i32: 1>} : vector<16x32xi32>
    %c1_i32_0 = arith.constant 1 : i32
    %24 = vector.broadcast %c1_i32_0 : i32 to vector<16x32xi32>
    %25 = arith.shrsi %23, %24 : vector<16x32xi32>
    %c1_i32_1 = arith.constant 1 : i32
    %26 = vector.broadcast %c1_i32_1 : i32 to vector<16x32xi32>
    %27 = arith.andi %23, %26 : vector<16x32xi32>
    %c1_i32_2 = arith.constant 1 : i32
    %28 = vector.broadcast %c1_i32_2 : i32 to vector<16x32xi32>
    %29 = arith.cmpi eq, %27, %28 : vector<16x32xi32>
    %30 = arith.sitofp %22 : vector<16x32xi32> to vector<16x32xf32>
    %cst = arith.constant 1.250000e-01 : f32
    %31 = vector.broadcast %cst : f32 to vector<16x32xf32>
    %32 = arith.mulf %31, %30 : vector<16x32xf32>
    %cst_3 = arith.constant -1.000000e+00 : f32
    %33 = vector.broadcast %cst_3 : f32 to vector<16x32xf32>
    %34 = arith.addf %33, %32 : vector<16x32xf32>
    %35 = arith.sitofp %25 : vector<16x32xi32> to vector<16x32xf32>
    %cst_4 = arith.constant 1.250000e-01 : f32
    %36 = vector.broadcast %cst_4 : f32 to vector<16x32xf32>
    %37 = arith.mulf %36, %35 : vector<16x32xf32>
    %cst_5 = arith.constant -1.000000e+00 : f32
    %38 = vector.broadcast %cst_5 : f32 to vector<16x32xf32>
    %39 = arith.addf %38, %37 : vector<16x32xf32>
    %40 = vector.broadcast %12 : f32 to vector<16x32xf32>
    %41 = vector.broadcast %3 : f32 to vector<16x32xf32>
    %42 = arith.select %29, %40, %41 : vector<16x32xi1>, vector<16x32xf32>
    %43 = vector.broadcast %15 : f32 to vector<16x32xf32>
    %44 = vector.broadcast %6 : f32 to vector<16x32xf32>
    %45 = arith.select %29, %43, %44 : vector<16x32xi1>, vector<16x32xf32>
    %46 = vector.broadcast %18 : f32 to vector<16x32xf32>
    %47 = vector.broadcast %9 : f32 to vector<16x32xf32>
    %48 = arith.select %29, %46, %47 : vector<16x32xi1>, vector<16x32xf32>
    %49 = arith.mulf %42, %34 : vector<16x32xf32>
    %50 = arith.mulf %45, %39 : vector<16x32xf32>
    %51 = arith.addf %49, %50 : vector<16x32xf32>
    %52 = arith.addf %51, %48 : vector<16x32xf32>
    %c0 = arith.constant 0 : index
    %c0_6 = arith.constant 0 : index
    %c0_7 = arith.constant 0 : index
    %53 = vector.load %arg3[%c0, %c0_6, %c0_7] : memref<1x16x32xf32, #tpu.memory_space<vmem>>, vector<1x16x32xf32>
    %54 = vector.shape_cast %53 : vector<1x16x32xf32> to vector<16x32xf32>
    %55 = vector.shape_cast %52 : vector<16x32xf32> to vector<1x16x32xf32>
    tpu.vector_store %arg3[%c0, %c0_6, %c0_7], %55 {strides = array<i32>} : memref<1x16x32xf32, #tpu.memory_space<vmem>>, vector<1x16x32xf32>,
    return
  }
  func.func @transform_0(%arg0: i32, %arg1: i32, %arg2: memref<12xf32, #tpu.memory_space<smem>>) -> (i32, i32, i32) {
    %c0_i32 = arith.constant 0 : i32
    %c0_i32_0 = arith.constant 0 : i32
    return %arg0, %arg1, %c0_i32 : i32, i32, i32
  }
}

</mosaic_0001>

<bundles_post_ra>
// kernel: tpu_custom_call.1
= control target key start
LH: loop header
LB: loop body
LE: loop exit
PB: predicated region body
PF: predicated region fallthrough
CT: control target
= control target key end

     0   :  { %s320_s9 = smov [#allocation3]   ;;  %s425_s0 = inlined_call_operand.hbm [shape: f32[12], index: 0, kind: input, shape index: {}]   ;;  %s426_s1 = inlined_call_operand.hbm [shape: f32[2,16,32], index: 1, kind: output, shape index: {}]  }
   0x1   :  { %s7_s8 = sshll.u32 %s425_s0, 4  ;;  %s8_s8 = int_to_ptr.hbm [resolvable:$true] %s7_s8 }
   0x2   :  { %10 = dma.hbm_to_smem %s8_s8, 16, %s320_s9, [#allocation2] }
   0x3   :  { %298 = dma.done.wait [#allocation2], 16 }
   0x4   :  { %299 = vsyncadd [#allocation2], 4294967280 }
   0x5   :  { %13 = sfence }
   0x6   :  { %14 = vsyncpa [#allocation5], 0 }
   0x7   :  { %16 = vsyncpa [#allocation5 + $0x1], 0  ;;  %s336_s10 = smov 0   ;;  %s338_s11 = smov 0  }
   0x8   :  { %s340_s12 = smov 0   ;;  %s342_s13 = smov 0  }
   0x9 LB: > { %s31_s0 = sadd.s32 1, %s314_s12  ;;  %s190_s14 = sadd.s32 4294967295, %s318_s13   ;;  %s318_s13 = sphi %s342_s13, %s22_s13   ;;  %s314_s12 = sphi %s340_s12, %s433_s12   ;;  %s310_s11 = sphi %s338_s11, %s432_s11   ;;  %s306_s10 = sphi %s336_s10, %s431_s10  }
   0xa   : > { %p33_p0 = scmp.ge.s32.totalorder %s31_s0, 2  ;;  %p49_p1 = scmp.ne.s32.totalorder %s310_s11, %s306_s10 }
   0xb   : > { %s40_s15 = sadd.s32 1, %s310_s11  ;;  %p50_p2 = scmp.eq.s32.totalorder %s190_s14, 1 }
   0xc   : > { %s435_s0 = smov (%p33_p0, %s31_s0), 0  ;;  %p44_p3 = scmp.eq.s32.totalorder %s318_s13, 1 }
   0xd   : > { %s35_s16 = ssub.s32 %s314_s12, %s435_s0  ;;  %p366_p6 = por %p50_p2, %p49_p1 }
   0xe   : > { %p38_p4 = scmp.eq.s32.totalorder %s35_s16, 0  ;;  %p191_p5 = scmp.ne.s32.totalorder %s35_s16, 0 }
   0xf   : > { %p192_p8 = scmp.ge.s32.totalorder %s318_s13, 2 }
  0x10   : > { %s371_s18 = scalar_select %p38_p4, %s310_s11, %s40_s15  }
  0x11   : > { %p373_p7 = por %p191_p5, %p44_p3  ;;  %59 = sbr.rel (%p192_p8) target bundleno = 43 (0x2b), region = 12 }
  0x12   : > { %s68_s20 = smul.u32 (!%p192_p8), 6, %s314_s12  ;;  %s64_s30 = sand.u32 (!%p192_p8), 1, %s310_s11  }
  0x13   : > { %s193_s4 = sshll.u32 (!%p192_p8), %s64_s30, 4  ;;  %s199_s5 = sshll.u32 (!%p192_p8), %s314_s12, 4 }
  0x14   : > { %s379_s21 = sld [smem:[#allocation3 + %s68_s20]] (!%p192_p8)  ;;  %s70_s22 = sadd.s32 (!%p192_p8), 1, %s68_s20 }
  0x15   : > { %s72_s23 = sadd.s32 (!%p192_p8), 2, %s68_s20  ;;  %s381_s24 = sld [smem:[#allocation3 + %s70_s22]] (!%p192_p8) }
  0x16   : > { %v80_v0 = vlaneseq  ;;  %s74_s25 = sadd.s32 3, %s68_s20  ;;  %s383_s26 = sld [smem:[#allocation3 + %s72_s23]]  ;;  %vm117_vm1 = vcmask 261120  }
  0x17   : > { %s76_s27 = sadd.s32 4, %s68_s20  ;;  %s75_s28 = sld [smem:[#allocation3 + %s74_s25]] }
  0x18   : > { %v81_v1 = vshrl.u32 %v80_v0, 7  ;;  %v88_v2 = vand.u32 127, %v80_v0  ;;  %s78_s29 = sadd.s32 5, %s68_s20  ;;  %s77_s2 = sld [smem:[#allocation3 + %s76_s27]] }
  0x19   : > { %s79_s3 = sld [smem:[#allocation3 + %s78_s29]]  ;;  %s134_s8 = scalar_lea.hbm %s426_s1, %s199_s5 }
  0x1a   : > { %v89_v3 = vshra.s32 %v88_v2, 1  ;;  %v92_v4 = vcvt.s32.f32 %v81_v1  ;;  %v82_v5 = vadd.s32 8, %v81_v1  ;;  %v90_v6 = vand.u32 1, %v88_v2  ;;  %s66_s9 = scalar_lea.vmem [#allocation4], %s193_s4  ;;  %s137_s14 = sshll.u32 %s134_s8, 4  ;;  %s138_s14 = int_to_ptr.hbm [resolvable:$true] %s137_s14 }
  0x1b   : > { %v102_v14 = vstv %s379_s21  ;;  %v105_v17 = vstv %s381_s24  ;;  %s135_s12 = sshll.u32 %s66_s9, 4  ;;  %s121_s15 = scalar_lea.sflag [#allocation5], %s64_s30  ;;  %s136_s12 = int_to_ptr.vmem [resolvable:$true] %s135_s12 }
  0x1c   : > { %v94_v7 = vmul.f32 0.125, %v92_v4  ;;  %v98_v8 = vcvt.s32.f32 %v89_v3  ;;  %v93_v9 = vcvt.s32.f32 %v82_v5  ;;  %vm388_vm0 = vcmp.eq.s32.totalorder %v90_v6, 1  ;;  %s321_s16 = smov 128   ;;  %s322_s20 = smov 8  }
  0x1d   : > { %v101_v18 = vstv %s75_s28  ;;  %v108_v21 = vstv %s383_s26 }
  0x1e   : > { %v99_v10 = vmul.f32 0.125, %v98_v8  ;;  %v95_v11 = vmul.f32 0.125, %v93_v9  ;;  %v96_v13 = vadd.f32 -1.0, %v94_v7  ;;  %v103_v19 = vsel %vm388_vm0, %v101_v18, %v102_v14 }
  0x1f   : > { %v104_v20 = vstv %s77_s2  ;;  %v107_v23 = vstv %s79_s3 }
  0x20   : > { %v97_v15 = vadd.f32 -1.0, %v95_v11  ;;  %v100_v16 = vadd.f32 -1.0, %v99_v10  ;;  %v106_v22 = vsel %vm388_vm0, %v104_v20, %v105_v17  ;;  %v110_v24 = vmul.f32 %v103_v19, %v96_v13 }
  0x21   : > { %v109_v27 = vsel %vm388_vm0, %v107_v23, %v108_v21 }
  0x22   : > { %v111_v25 = vmul.f32 %v103_v19, %v97_v15  ;;  %v112_v26 = vmul.f32 %v106_v22, %v100_v16 }
  0x24   : > { %v113_v28 = vadd.f32 %v112_v26, %v110_v24  ;;  %v114_v29 = vadd.f32 %v112_v26, %v111_v25 }
  0x26   : > { %v115_v30 = vadd.f32 %v113_v28, %v109_v27  ;;  %v116_v31 = vadd.f32 %v114_v29, %v109_v27 }
  0x28   : > { %118 = vst.msk [vmem:[%s66_s9] sm:$0xff] %vm117_vm1, %v115_v30 }
  0x29   : > { %119 = vst.msk [vmem:[%s66_s9 + $0x8] sm:$0xff] %vm117_vm1, %v116_v31 }
  0x2a   : > { %200 = dma.vmem_to_hbm [thread:$0]  (%p373_p7), %s136_s12, 256, %s138_s14, %s121_s15, %s321_s16, %s321_s16, %s322_s20  }
  0x2b PF: > { %p206_p9 = scmp.ge.s32.totalorder %s318_s13, 1  ;;  %s152_s21 = sand.u32 1, %s306_s10  }
  0x2c   : > { %s153_s22 = scalar_lea.sflag [#allocation5], %s152_s21 }
  0x2d   : > { %p203_p10 = pnand %p206_p9, %p366_p6 }
  0x2f   : > { %p204_p11 = pneg %p203_p10 }
  0x31   : > { %301 = dma.done.wait (%p204_p11), %s153_s22, 256  }
  0x32   : > { %303 = vsyncadd (%p204_p11), %s153_s22, 4294967040  ;;  %s22_s13 = sadd.s32 1, %s318_s13   ;;  %s431_s10 = smov %s310_s11 }
  0x33   : > { %p19_p12 = scmp.ge.s32.totalorder %s22_s13, 3   ;;  %s432_s11 = smov %s371_s18 }
  0x34   : > { %s433_s12 = smov %s435_s0 }
  0x35   :  { %21 = sbr.rel (!%p19_p12) target bundleno = 9 (0x9), region = 44 }
  0x3a   :  { %159 = vsyncpa [#allocation5], 1 }
  0x3b   :  { %161 = vsyncpa [#allocation5 + $0x1], 1 }

</bundles_post_ra>
